<compile_context>
chip_gen: v7x
topology: tpu7x:2x2x1
jax: 0.10.0
libtpu: 0.0.40
codegen_flags: <defaults>
</compile_context>

<pallas_src>
import numpy as np
import jax
import jax.numpy as jnp
from jax.experimental import pallas as pl
from jax.experimental.pallas import tpu as pltpu

SIGMA_MIN = 1e-4      # sigma_ in the reference
ALPHA = 10            # alpha
EPS = 1e-8            # eps
LANE = 128


def _round_up(x, m):
    return ((x + m - 1) // m) * m


# ----------------------------- Pallas kernel ------------------------------ #
def _cmi_gram_kernel(bi_ref, bj_ref, scal_ref,
                     yc_ref, yr_ref, dc_ref, dr_ref,
                     sqc_ref, sqr_ref, ei_ref, ej_ref,
                     kde_ref, kye_ref, ke_ref, kyde_ref):
    """One lower-triangular (TILE, TILE) tile of the trace-normalized kernels:

         K_E   =  G_E              / (n + eps)
         K_DE  = (G_D * G_E)       / (n + eps)
         K_YE  = (G_Y * G_E)       / (n + eps)
         K_YDE = (G_Y * G_D * G_E) / (n + eps)

    G_E = exp(-pairwise_dist(E) / s_E); the 1/(n+eps) trace constant and the
    -1/s_E scale are pre-folded into the row-norm vectors (sqc also carries
    ln(1/(n+eps))), so g_e below is already trace-normalized.  G_Y / G_D are
    exact label-equality grams (one-hot squared distance is 0 or 2)."""
    del bi_ref, bj_ref                      # consumed only by the index_maps
    off_y = scal_ref[0]                     # exp(-2 / s_Y)
    off_d = scal_ref[1]                     # exp(-2 / s_D)
    two_over_se = scal_ref[2]               # 2 / s_E

    # xxT on the MXU; kept f32 (bf16 cast would cut MXU passes on v6e/v7x but
    # exp amplifies distance error, so precision is preserved here).
    xxT = jax.lax.dot_general(
        ei_ref[...], ej_ref[...], (((1,), (1,)), ((), ())),
        preferred_element_type=jnp.float32)                    # (T, T)
    # arg = -dist/s_E + ln(1/(n+eps));  sqc = -|e_i|^2/s_E + ln(1/(n+eps)),
    # sqr = -|e_j|^2/s_E  (pre-scaled O(N) vectors, no in-kernel transpose).
    g_e = jnp.exp(xxT * two_over_se + sqc_ref[...] + sqr_ref[...])

    g_y = jnp.where(yc_ref[...] == yr_ref[...], 1.0, off_y)
    g_d = jnp.where(dc_ref[...] == dr_ref[...], 1.0, off_d)

    kde = g_d * g_e                         # reused for K_DE and K_YDE
    ke_ref[...] = g_e
    kde_ref[...] = kde
    kye_ref[...] = g_y * g_e
    kyde_ref[...] = g_y * kde


def _pick_tile(n, fpad):
    """Largest tile in {512, 256, 128} whose double-buffered VMEM footprint
    (4 f32 output tiles + 2 E blocks) fits a 40 MiB budget (v7x headroom),
    capped by the padded problem size so tiny batches stay at 128."""
    cap = _round_up(max(n, 1), LANE)
    budget = 40 << 20
    for cand in (512, 256, 128):
        if cand > cap:
            continue
        foot = 4 * 2 * cand * cand * 4 + 2 * 2 * cand * fpad * 4
        if foot <= budget:
            return cand
    # TODO(synk): for very large feature dims add a third "arbitrary" grid
    # axis over fpad with an f32 VMEM accumulator for xxT instead of shrinking
    # the tile further.
    return LANE


def _gram_products(scal, y_col, y_row, d_col, d_row, sq_col, sq_row, Ep, tile):
    npad, fp = Ep.shape
    nblk = npad // tile

    # Lower-triangular tile enumeration, bi non-decreasing (row-side blocks are
    # fetched once per tile-row thanks to Pallas' unchanged-index DMA skip).
    bi = np.concatenate([np.full(i + 1, i, dtype=np.int32) for i in range(nblk)])
    bj = np.concatenate([np.arange(i + 1, dtype=np.int32) for i in range(nblk)])
    nsteps = int(bi.shape[0])
    bi = jnp.asarray(bi)
    bj = jnp.asarray(bj)

    row_i = lambda t, bi_r, bj_r: (bi_r[t], 0)          # row-side (i) blocks
    col_j = lambda t, bi_r, bj_r: (0, bj_r[t])          # col-side (j) blocks
    e_j = lambda t, bi_r, bj_r: (bj_r[t], 0)            # E row-block j
    out_map = lambda t, bi_r, bj_r: (bi_r[t], bj_r[t])  # lower-tri tile

    out_shape = tuple(
        jax.ShapeDtypeStruct((npad, npad), jnp.float32) for _ in range(4))

    foot = 4 * 2 * tile * tile * 4 + 2 * 2 * tile * fp * 4
    vmem_limit = min(48 << 20, max(foot + (4 << 20), 16 << 20))

    grid_spec = pltpu.PrefetchScalarGridSpec(
        num_scalar_prefetch=2,
        grid=(nsteps,),
        in_specs=[
            pl.BlockSpec(memory_space=pltpu.MemorySpace.SMEM),  # scalars (3,)
            pl.BlockSpec((tile, 1), row_i),                     # y  (row side)
            pl.BlockSpec((1, tile), col_j),                     # y  (col side)
            pl.BlockSpec((tile, 1), row_i),                     # d  (row side)
            pl.BlockSpec((1, tile), col_j),                     # d  (col side)
            pl.BlockSpec((tile, 1), row_i),                     # -|e|^2/s_E + ln(1/(n+eps))
            pl.BlockSpec((1, tile), col_j),                     # -|e|^2/s_E
            pl.BlockSpec((tile, fp), row_i),                    # E row-block i
            pl.BlockSpec((tile, fp), e_j),                      # E row-block j
        ],
        out_specs=tuple(
            pl.BlockSpec((tile, tile), out_map) for _ in range(4)),
    )
    return pl.pallas_call(
        _cmi_gram_kernel,
        out_shape=out_shape,
        grid_spec=grid_spec,
        compiler_params=pltpu.CompilerParams(
            dimension_semantics=("parallel",),
            vmem_limit_bytes=vmem_limit),
    )(bi, bj, scal, y_col, y_row, d_col, d_row, sq_col, sq_row, Ep, Ep)


# ------------------------------- JAX glue --------------------------------- #
def calculate_sigma(Z):
    """Mirror of the reference calculate_sigma for real-valued Z: mean of the
    first min(10, N) columns of the (unsquared) euclidean distance matrix
    (np.sort along axis 1 is a no-op under the mean), floored at sigma_."""
    if Z.ndim == 1:
        Z = Z[:, None]
    sq = jnp.sum(Z * Z, axis=-1)
    d2 = sq[:, None] - 2.0 * (Z @ Z.T) + sq[None, :]
    k = jnp.sqrt(jnp.maximum(d2, 0.0))
    m = min(10, k.shape[1])
    sigma = jnp.mean(jnp.sort(k[:, :m], axis=1))
    return jnp.maximum(sigma, SIGMA_MIN)


def _label_sigma(labels):
    """calculate_sigma(one_hot(labels)): the one-hot pairwise euclidean
    distance is exactly sqrt(2) * (label_i != label_j), so the one-hot matrix
    is never built."""
    n = labels.shape[0]
    k = jnp.sqrt(2.0) * (labels[:, None] != labels[None, :]).astype(jnp.float32)
    m = min(10, n)
    sigma = jnp.mean(jnp.sort(k[:, :m], axis=1))
    return jnp.maximum(sigma, SIGMA_MIN)


def _symmetrize_lower(k, n):
    """Slice off the pad and reflect the written lower triangle onto the
    (never-written, uninitialized) upper triangle.  Pure selection, so any
    garbage (even NaN) in the upper blocks never enters the arithmetic."""
    k = k[:n, :n]
    r = jax.lax.broadcasted_iota(jnp.int32, (n, n), 0)
    c = jax.lax.broadcasted_iota(jnp.int32, (n, n), 1)
    return jnp.where(r >= c, k, k.T)


def _renyi_entropy_from_kernel(k):
    # TODO(synk): symmetric eigendecomposition has no Pallas/Mosaic equivalent;
    # done with jnp.linalg.eigh on the (n, n) symmetrized kernel outside.
    eigv = jnp.abs(jnp.linalg.eigh(k)[0])
    eig_pow = eigv ** ALPHA
    return (1.0 / (1.0 - ALPHA)) * (jnp.log(jnp.sum(eig_pow)) / jnp.log(2.0))


def cmi_loss(y, d, E, classes_number, domain_number):
    """CMILoss.forward: CI = H(D,E) + H(Y,E) - H(E) - H(Y,D,E).

    classes_number / domain_number are kept for signature parity; the one-hot
    encodings they parameterize are folded into exact label-equality grams."""
    del classes_number, domain_number
    y = y.astype(jnp.int32)
    d = d.astype(jnp.int32)
    E = E.astype(jnp.float32)
    n, f = E.shape

    # sigma statistics (tiny, plain JAX)
    s_Y = _label_sigma(y) ** 2
    s_D = _label_sigma(d) ** 2
    s_E = calculate_sigma(E) ** 2

    # Scalars consumed by the kernel (SMEM): G_Y/G_D off-diagonal values use
    # the squared one-hot distance (= 2), matching pairwise_distances() which
    # is squared; 2/s_E scales the MXU product inside the exp argument.
    scal = jnp.stack([
        jnp.exp(-2.0 / s_Y),
        jnp.exp(-2.0 / s_D),
        2.0 / s_E,
    ]).astype(jnp.float32)

    # Tile first, then pad the batch axis to a multiple of it (lane-dense
    # stores); feature axis padded to a lane multiple (zero pad preserves
    # distances).
    fpad = _round_up(f, LANE)
    tile = _pick_tile(n, fpad)
    npad = _round_up(max(n, tile), tile)

    Ep = jnp.pad(E, ((0, npad - n), (0, fpad - f)))
    yp = jnp.pad(y, (0, npad - n))
    dp = jnp.pad(d, (0, npad - n))

    # Pre-scaled O(N) row-norm vectors (constant folding into the exp arg).
    sq = jnp.sum(Ep * Ep, axis=-1)
    neg_inv_se = -1.0 / s_E
    ln_inv_tr = -jnp.log(jnp.float32(n) + jnp.float32(EPS))   # ln(1/(n+eps))
    sq_col = (sq * neg_inv_se + ln_inv_tr)[:, None].astype(jnp.float32)
    sq_row = (sq * neg_inv_se)[None, :].astype(jnp.float32)

    kde, kye, ke, kyde = _gram_products(
        scal,
        yp[:, None], yp[None, :],
        dp[:, None], dp[None, :],
        sq_col, sq_row,
        Ep, tile)

    kde, kye, ke, kyde = (_symmetrize_lower(m, n)
                          for m in (kde, kye, ke, kyde))

    HDE = _renyi_entropy_from_kernel(kde)
    HYE = _renyi_entropy_from_kernel(kye)
    HE = _renyi_entropy_from_kernel(ke)
    HYDE = _renyi_entropy_from_kernel(kyde)
    return HDE + HYE - HE - HYDE


# --------------------------------- main ----------------------------------- #
if __name__ == "__main__":
    key = jax.random.PRNGKey(0)
    N, F = 8, 32
    classes_number, domain_number = 3, 2

    ky, kd, ke = jax.random.split(key, 3)
    y = jax.random.randint(ky, (N,), 0, classes_number, dtype=jnp.int32)
    d = jax.random.randint(kd, (N,), 0, domain_number, dtype=jnp.int32)
    E = jax.random.normal(ke, (N, F), dtype=jnp.float32)

    ci = cmi_loss(y, d, E, classes_number, domain_number)
    jax.block_until_ready(ci)
    print("KERNEL_OK")
</pallas_src>

<mosaic_0001>
module attributes {stable_mosaic.version = 11 : i64} {
  func.func @_cmi_gram_kernel(%arg0: i32, %arg1: memref<1xi32, #tpu.memory_space<smem>>, %arg2: memref<1xi32, #tpu.memory_space<smem>>, %arg3: memref<3xf32, #tpu.memory_space<smem>>, %arg4: memref<128x1xi32, #tpu.memory_space<vmem>>, %arg5: memref<1x128xi32, #tpu.memory_space<vmem>>, %arg6: memref<128x1xi32, #tpu.memory_space<vmem>>, %arg7: memref<1x128xi32, #tpu.memory_space<vmem>>, %arg8: memref<128x1xf32, #tpu.memory_space<vmem>>, %arg9: memref<1x128xf32, #tpu.memory_space<vmem>>, %arg10: memref<128x128xf32, #tpu.memory_space<vmem>>, %arg11: memref<128x128xf32, #tpu.memory_space<vmem>>, %arg12: memref<128x128xf32, #tpu.memory_space<vmem>>, %arg13: memref<128x128xf32, #tpu.memory_space<vmem>>, %arg14: memref<128x128xf32, #tpu.memory_space<vmem>>, %arg15: memref<128x128xf32, #tpu.memory_space<vmem>>) attributes {dimension_semantics = [#tpu.dimension_semantics<parallel>], iteration_bounds = array<i64: 1>, scalar_prefetch = 2 : i64, scratch_operands = 0 : i64, tpu.core_type = #tpu.core_type<tc>, window_params = [{transform_indices = @transform_0, window_bounds = array<i64: 3>}, {transform_indices = @transform_1, window_bounds = array<i64: 128, 1>}, {transform_indices = @transform_2, window_bounds = array<i64: 1, 128>}, {transform_indices = @transform_3, window_bounds = array<i64: 128, 1>}, {transform_indices = @transform_4, window_bounds = array<i64: 1, 128>}, {transform_indices = @transform_5, window_bounds = array<i64: 128, 1>}, {transform_indices = @transform_6, window_bounds = array<i64: 1, 128>}, {transform_indices = @transform_7, window_bounds = array<i64: 128, 128>}, {transform_indices = @transform_8, window_bounds = array<i64: 128, 128>}, {transform_indices = @transform_9, window_bounds = array<i64: 128, 128>}, {transform_indices = @transform_10, window_bounds = array<i64: 128, 128>}, {transform_indices = @transform_11, window_bounds = array<i64: 128, 128>}, {transform_indices = @transform_12, window_bounds = array<i64: 128, 128>}]} {
    %c0 = arith.constant 0 : index
    %0 = memref.load %arg3[%c0] : memref<3xf32, #tpu.memory_space<smem>>
    %c1 = arith.constant 1 : index
    %1 = memref.load %arg3[%c1] : memref<3xf32, #tpu.memory_space<smem>>
    %c2 = arith.constant 2 : index
    %2 = memref.load %arg3[%c2] : memref<3xf32, #tpu.memory_space<smem>>
    %c0_0 = arith.constant 0 : index
    %c0_1 = arith.constant 0 : index
    %3 = vector.load %arg10[%c0_0, %c0_1] : memref<128x128xf32, #tpu.memory_space<vmem>>, vector<128x128xf32>
    %c0_2 = arith.constant 0 : index
    %c0_3 = arith.constant 0 : index
    %4 = vector.load %arg11[%c0_2, %c0_3] : memref<128x128xf32, #tpu.memory_space<vmem>>, vector<128x128xf32>
    %cst = arith.constant dense<0.000000e+00> : vector<128x128xf32>
    %5 = tpu.matmul %3, %4, %cst {dimension_numbers = #tpu.dot_dimension_numbers<[1], [1], [0], [0], [0, 0, 1, 0], [], []>} : vector<128x128xf32>, vector<128x128xf32>, vector<128x128xf32> -> vector<128x128xf32>
    %6 = vector.broadcast %2 : f32 to vector<128x128xf32>
    %7 = arith.mulf %5, %6 : vector<128x128xf32>
    %c0_4 = arith.constant 0 : index
    %c0_5 = arith.constant 0 : index
    %8 = vector.load %arg8[%c0_4, %c0_5] : memref<128x1xf32, #tpu.memory_space<vmem>>, vector<128x1xf32>
    %9 = vector.broadcast %8 : vector<128x1xf32> to vector<128x128xf32>
    %10 = arith.addf %7, %9 : vector<128x128xf32>
    %c0_6 = arith.constant 0 : index
    %c0_7 = arith.constant 0 : index
    %11 = vector.load %arg9[%c0_6, %c0_7] : memref<1x128xf32, #tpu.memory_space<vmem>>, vector<1x128xf32>
    %12 = vector.broadcast %11 : vector<1x128xf32> to vector<128x128xf32>
    %13 = arith.addf %10, %12 : vector<128x128xf32>
    %14 = math.exp %13 : vector<128x128xf32>
    %c0_8 = arith.constant 0 : index
    %c0_9 = arith.constant 0 : index
    %15 = vector.load %arg4[%c0_8, %c0_9] : memref<128x1xi32, #tpu.memory_space<vmem>>, vector<128x1xi32>
    %c0_10 = arith.constant 0 : index
    %c0_11 = arith.constant 0 : index
    %16 = vector.load %arg5[%c0_10, %c0_11] : memref<1x128xi32, #tpu.memory_space<vmem>>, vector<1x128xi32>
    %17 = vector.broadcast %15 : vector<128x1xi32> to vector<128x128xi32>
    %18 = vector.broadcast %16 : vector<1x128xi32> to vector<128x128xi32>
    %19 = arith.cmpi eq, %17, %18 : vector<128x128xi32>
    %cst_12 = arith.constant 1.000000e+00 : f32
    %20 = vector.broadcast %cst_12 : f32 to vector<128x128xf32>
    %21 = vector.broadcast %0 : f32 to vector<128x128xf32>
    %22 = arith.select %19, %20, %21 : vector<128x128xi1>, vector<128x128xf32>
    %c0_13 = arith.constant 0 : index
    %c0_14 = arith.constant 0 : index
    %23 = vector.load %arg6[%c0_13, %c0_14] : memref<128x1xi32, #tpu.memory_space<vmem>>, vector<128x1xi32>
    %c0_15 = arith.constant 0 : index
    %c0_16 = arith.constant 0 : index
    %24 = vector.load %arg7[%c0_15, %c0_16] : memref<1x128xi32, #tpu.memory_space<vmem>>, vector<1x128xi32>
    %25 = vector.broadcast %23 : vector<128x1xi32> to vector<128x128xi32>
    %26 = vector.broadcast %24 : vector<1x128xi32> to vector<128x128xi32>
    %27 = arith.cmpi eq, %25, %26 : vector<128x128xi32>
    %cst_17 = arith.constant 1.000000e+00 : f32
    %28 = vector.broadcast %cst_17 : f32 to vector<128x128xf32>
    %29 = vector.broadcast %1 : f32 to vector<128x128xf32>
    %30 = arith.select %27, %28, %29 : vector<128x128xi1>, vector<128x128xf32>
    %31 = arith.mulf %30, %14 : vector<128x128xf32>
    %c0_18 = arith.constant 0 : index
    %c0_19 = arith.constant 0 : index
    %32 = vector.load %arg14[%c0_18, %c0_19] : memref<128x128xf32, #tpu.memory_space<vmem>>, vector<128x128xf32>
    tpu.vector_store %arg14[%c0_18, %c0_19], %14 {strides = array<i32>} : memref<128x128xf32, #tpu.memory_space<vmem>>, vector<128x128xf32>,
    %c0_20 = arith.constant 0 : index
    %c0_21 = arith.constant 0 : index
    %33 = vector.load %arg12[%c0_20, %c0_21] : memref<128x128xf32, #tpu.memory_space<vmem>>, vector<128x128xf32>
    tpu.vector_store %arg12[%c0_20, %c0_21], %31 {strides = array<i32>} : memref<128x128xf32, #tpu.memory_space<vmem>>, vector<128x128xf32>,
    %34 = arith.mulf %22, %14 : vector<128x128xf32>
    %c0_22 = arith.constant 0 : index
    %c0_23 = arith.constant 0 : index
    %35 = vector.load %arg13[%c0_22, %c0_23] : memref<128x128xf32, #tpu.memory_space<vmem>>, vector<128x128xf32>
    tpu.vector_store %arg13[%c0_22, %c0_23], %34 {strides = array<i32>} : memref<128x128xf32, #tpu.memory_space<vmem>>, vector<128x128xf32>,
    %36 = arith.mulf %22, %31 : vector<128x128xf32>
    %c0_24 = arith.constant 0 : index
    %c0_25 = arith.constant 0 : index
    %37 = vector.load %arg15[%c0_24, %c0_25] : memref<128x128xf32, #tpu.memory_space<vmem>>, vector<128x128xf32>
    tpu.vector_store %arg15[%c0_24, %c0_25], %36 {strides = array<i32>} : memref<128x128xf32, #tpu.memory_space<vmem>>, vector<128x128xf32>,
    return
  }
  func.func @transform_0(%arg0: i32, %arg1: memref<1xi32, #tpu.memory_space<smem>>, %arg2: memref<1xi32, #tpu.memory_space<smem>>) -> i32 {
    %c0_i32 = arith.constant 0 : i32
    %c0_i32_0 = arith.constant 0 : i32
    return %c0_i32 : i32
  }
  func.func @transform_1(%arg0: i32, %arg1: memref<1xi32, #tpu.memory_space<smem>>, %arg2: memref<1xi32, #tpu.memory_space<smem>>) -> (i32, i32) {
    %0 = arith.index_cast %arg0 : i32 to index
    %1 = memref.load %arg1[%0] : memref<1xi32, #tpu.memory_space<smem>>
    %c0_i32 = arith.constant 0 : i32
    %c0_i32_0 = arith.constant 0 : i32
    return %1, %c0_i32 : i32, i32
  }
  func.func @transform_2(%arg0: i32, %arg1: memref<1xi32, #tpu.memory_space<smem>>, %arg2: memref<1xi32, #tpu.memory_space<smem>>) -> (i32, i32) {
    %0 = arith.index_cast %arg0 : i32 to index
    %1 = memref.load %arg2[%0] : memref<1xi32, #tpu.memory_space<smem>>
    %c0_i32 = arith.constant 0 : i32
    %c0_i32_0 = arith.constant 0 : i32
    return %c0_i32, %1 : i32, i32
  }
  func.func @transform_3(%arg0: i32, %arg1: memref<1xi32, #tpu.memory_space<smem>>, %arg2: memref<1xi32, #tpu.memory_space<smem>>) -> (i32, i32) {
    %0 = arith.index_cast %arg0 : i32 to index
    %1 = memref.load %arg1[%0] : memref<1xi32, #tpu.memory_space<smem>>
    %c0_i32 = arith.constant 0 : i32
    %c0_i32_0 = arith.constant 0 : i32
    return %1, %c0_i32 : i32, i32
  }
  func.func @transform_4(%arg0: i32, %arg1: memref<1xi32, #tpu.memory_space<smem>>, %arg2: memref<1xi32, #tpu.memory_space<smem>>) -> (i32, i32) {
    %0 = arith.index_cast %arg0 : i32 to index
    %1 = memref.load %arg2[%0] : memref<1xi32, #tpu.memory_space<smem>>
    %c0_i32 = arith.constant 0 : i32
    %c0_i32_0 = arith.constant 0 : i32
    return %c0_i32, %1 : i32, i32
  }
  func.func @transform_5(%arg0: i32, %arg1: memref<1xi32, #tpu.memory_space<smem>>, %arg2: memref<1xi32, #tpu.memory_space<smem>>) -> (i32, i32) {
    %0 = arith.index_cast %arg0 : i32 to index
    %1 = memref.load %arg1[%0] : memref<1xi32, #tpu.memory_space<smem>>
    %c0_i32 = arith.constant 0 : i32
    %c0_i32_0 = arith.constant 0 : i32
    return %1, %c0_i32 : i32, i32
  }
  func.func @transform_6(%arg0: i32, %arg1: memref<1xi32, #tpu.memory_space<smem>>, %arg2: memref<1xi32, #tpu.memory_space<smem>>) -> (i32, i32) {
    %0 = arith.index_cast %arg0 : i32 to index
    %1 = memref.load %arg2[%0] : memref<1xi32, #tpu.memory_space<smem>>
    %c0_i32 = arith.constant 0 : i32
    %c0_i32_0 = arith.constant 0 : i32
    return %c0_i32, %1 : i32, i32
  }
  func.func @transform_7(%arg0: i32, %arg1: memref<1xi32, #tpu.memory_space<smem>>, %arg2: memref<1xi32, #tpu.memory_space<smem>>) -> (i32, i32) {
    %0 = arith.index_cast %arg0 : i32 to index
    %1 = memref.load %arg1[%0] : memref<1xi32, #tpu.memory_space<smem>>
    %c0_i32 = arith.constant 0 : i32
    %c0_i32_0 = arith.constant 0 : i32
    return %1, %c0_i32 : i32, i32
  }
  func.func @transform_8(%arg0: i32, %arg1: memref<1xi32, #tpu.memory_space<smem>>, %arg2: memref<1xi32, #tpu.memory_space<smem>>) -> (i32, i32) {
    %0 = arith.index_cast %arg0 : i32 to index
    %1 = memref.load %arg2[%0] : memref<1xi32, #tpu.memory_space<smem>>
    %c0_i32 = arith.constant 0 : i32
    %c0_i32_0 = arith.constant 0 : i32
    return %1, %c0_i32 : i32, i32
  }
  func.func @transform_9(%arg0: i32, %arg1: memref<1xi32, #tpu.memory_space<smem>>, %arg2: memref<1xi32, #tpu.memory_space<smem>>) -> (i32, i32) {
    %0 = arith.index_cast %arg0 : i32 to index
    %1 = memref.load %arg1[%0] : memref<1xi32, #tpu.memory_space<smem>>
    %2 = arith.index_cast %arg0 : i32 to index
    %3 = memref.load %arg2[%2] : memref<1xi32, #tpu.memory_space<smem>>
    %c0_i32 = arith.constant 0 : i32
    return %1, %3 : i32, i32
  }
  func.func @transform_10(%arg0: i32, %arg1: memref<1xi32, #tpu.memory_space<smem>>, %arg2: memref<1xi32, #tpu.memory_space<smem>>) -> (i32, i32) {
    %0 = arith.index_cast %arg0 : i32 to index
    %1 = memref.load %arg1[%0] : memref<1xi32, #tpu.memory_space<smem>>
    %2 = arith.index_cast %arg0 : i32 to index
    %3 = memref.load %arg2[%2] : memref<1xi32, #tpu.memory_space<smem>>
    %c0_i32 = arith.constant 0 : i32
    return %1, %3 : i32, i32
  }
  func.func @transform_11(%arg0: i32, %arg1: memref<1xi32, #tpu.memory_space<smem>>, %arg2: memref<1xi32, #tpu.memory_space<smem>>) -> (i32, i32) {
    %0 = arith.index_cast %arg0 : i32 to index
    %1 = memref.load %arg1[%0] : memref<1xi32, #tpu.memory_space<smem>>
    %2 = arith.index_cast %arg0 : i32 to index
    %3 = memref.load %arg2[%2] : memref<1xi32, #tpu.memory_space<smem>>
    %c0_i32 = arith.constant 0 : i32
    return %1, %3 : i32, i32
  }
  func.func @transform_12(%arg0: i32, %arg1: memref<1xi32, #tpu.memory_space<smem>>, %arg2: memref<1xi32, #tpu.memory_space<smem>>) -> (i32, i32) {
    %0 = arith.index_cast %arg0 : i32 to index
    %1 = memref.load %arg1[%0] : memref<1xi32, #tpu.memory_space<smem>>
    %2 = arith.index_cast %arg0 : i32 to index
    %3 = memref.load %arg2[%2] : memref<1xi32, #tpu.memory_space<smem>>
    %c0_i32 = arith.constant 0 : i32
    return %1, %3 : i32, i32
  }
}

</mosaic_0001>

<bundles_post_ra>
// kernel: tpu_custom_call.1
= control target key start
LH: loop header
LB: loop body
LE: loop exit
PB: predicated region body
PF: predicated region fallthrough
CT: control target
= control target key end

     0   :  { %22 = vsyncpa [#allocation7], 0  ;;  %s1994_s0 = inlined_call_operand.<no memory space> [shape: s32[1], index: 0, kind: input, shape index: {}]   ;;  %s1995_s1 = inlined_call_operand.<no memory space> [shape: s32[1], index: 1, kind: input, shape index: {}]   ;;  %s1996_s2 = inlined_call_operand.vmem [shape: f32[3], index: 2, kind: input, shape index: {}]   ;;  %s1997_s3 = inlined_call_operand.vmem [shape: s32[128,1], index: 3, kind: input, shape index: {}]   ;;  %s1998_s4 = inlined_call_operand.vmem [shape: s32[1,128], index: 4, kind: input, shape index: {}]   ;;  %s1999_s5 = inlined_call_operand.vmem [shape: s32[128,1], index: 5, kind: input, shape index: {}]   ;;  %s2000_s6 = inlined_call_operand.vmem [shape: s32[1,128], index: 6, kind: input, shape index: {}]   ;;  %s2001_s7 = inlined_call_operand.vmem [shape: f32[128,1], index: 7, kind: input, shape index: {}]   ;;  %s2002_s8 = inlined_call_operand.vmem [shape: f32[1,128], index: 8, kind: input, shape index: {}]   ;;  %s2003_s9 = inlined_call_operand.vmem [shape: f32[128,128], index: 9, kind: input, shape index: {}]   ;;  %s2004_s10 = inlined_call_operand.vmem [shape: f32[128,128], index: 10, kind: input, shape index: {}]   ;;  %s2005_s11 = inlined_call_operand.hbm [shape: f32[128,128], index: 11, kind: output, shape index: {0}]   ;;  %s2006_s12 = inlined_call_operand.hbm [shape: f32[128,128], index: 12, kind: output, shape index: {1}]   ;;  %s2007_s13 = inlined_call_operand.hbm [shape: f32[128,128], index: 13, kind: output, shape index: {2}]   ;;  %s2008_s14 = inlined_call_operand.hbm [shape: f32[128,128], index: 14, kind: output, shape index: {3}]  }
   0x1   :  { %23 = vsyncpa [#allocation6], 0 }
   0x2   :  { %24 = vsyncpa [#allocation10], 0 }
   0x3   :  { %25 = vsyncpa [#allocation13], 0  ;;  %s32_s15 = sshll.u32 %s1996_s2, 4  ;;  %s33_s15 = int_to_ptr.vmem [resolvable:$true] %s32_s15 }
   0x4   :  { %s1244_s16 = scalar_lea.vmem %s33_s15, 16  ;;  %p1249_p1 = scmp.lt.s32.totalorder %s33_s15, %s33_s15 }
   0x5   :  { %p1245_p0 = scmp.ne.s32.totalorder %s33_s15, %s1244_s16  ;;  %p1250_p2 = scmp.lt.s32.totalorder %s1244_s16, %s1244_s16 }
   0x7   :  { %p1251_p3 = por %p1250_p2, %p1249_p1 }
   0x9   :  { %p1252_p4 = pnand %p1251_p3, %p1245_p0 }
   0xb   :  { %1255 = shalt.err (!%p1252_p4)
}
   0xc   :  { %s1360_s17 = smov [#allocation5]  }
   0xd   :  { %35 = dma.vmem_to_smem %s33_s15, 16, %s1360_s17, [#allocation7]  }
   0xe   :  { %1352 = dma.done.wait [#allocation7], 16  }
   0xf   :  { %1353 = vsyncadd [#allocation7], 4294967280 }
  0x10   :  { %110 = sfence }
  0x11   :  { %s1449_s20 = sshll.u32 %s1994_s0, 4  ;;  %s1051_s22 = sshll.u32 %s1995_s1, 4  ;;  %v1361_v0 = vmov 0  }
  0x12   :  { %1211 = vset.pattern.permute.xlu1 %v1361_v0  ;;  %1210 = vset.pattern.permute.xlu0 %v1361_v0  ;;  %p155_p5 = scmp.lt.s32.totalorder %s1449_s20, 15  ;;  %p202_p6 = scmp.lt.s32.totalorder %s1051_s22, 15 }
  0x13   :  { %p162_p7 = scmp.lt.s32.totalorder %s1995_s1, 0  ;;  %s1054_s28 = sld [smem:[#allocation5 + $0x2]] }
  0x14   :  { %s156_s23 = scalar_select %p155_p5, %s1449_s20, 15 }
  0x15   :  { %s2017_s22 = smov (!%p202_p6, %s1051_s22), 15  ;;  %s1364_s26 = smov [#allocation11]  }
  0x16   :  { %s1456_s24 = sshll.u32 %s156_s23, 3  ;;  %s1052_s27 = sshll.u32 %s2017_s22, 3 }
  0x17   :  { %s1462_s0 = scalar_lea.vmem %s2001_s7, %s1456_s24  ;;  %s1471_s30 = scalar_lea.vmem %s2004_s10, %s1052_s27 }
  0x18   :  { %v419_v1 = vld [vmem:[%s1462_s0 + $0x10] sm:$0xff]  ;;  %v417_v2 = vld [vmem:[%s1462_s0] sm:$0xff]  ;;  %v420_v3 = vld [vmem:[%s1462_s0 + $0x18] sm:$0xff]  ;;  %s1487_s15 = scalar_lea.vmem %s2003_s9, %s1456_s24  ;;  %s1505_s17 = scalar_lea.vmem %s1997_s3, %s1456_s24 }
  0x19   :  { %445 = vperm.xlu1 %1211, %v419_v1   ;;  %435 = vperm.xlu0 %1210, %v417_v2   ;;  %v418_v4 = vld [vmem:[%s1462_s0 + $0x8] sm:$0xff]  ;;  %v239_v5 = vld [vmem:[%s1471_s30] sm:$0xff]  ;;  %v241_v7 = vld [vmem:[%s1471_s30 + $0x10] sm:$0xff]  ;;  %s1533_s19 = scalar_lea.vmem %s1999_s5, %s1456_s24  ;;  %s220_s24 = sld [smem:[#allocation5]] }
  0x1a   :  { %v240_v6 = vld [vmem:[%s1471_s30 + $0x8] sm:$0xff]  ;;  %v242_v9 = vld [vmem:[%s1471_s30 + $0x18] sm:$0xff]  ;;  %v421_v11 = vld [vmem:[%s1462_s0 + $0x20] sm:$0xff]  ;;  %s1609_s23 = scalar_select %p162_p7, %s1995_s1, 0 }
  0x1b   :  { %v1154_v8 = vpack.c.bf16 %v240_v6, %v239_v5  ;;  %v422_v10 = vld [vmem:[%s1462_s0 + $0x28] sm:$0xff]  ;;  %v1158_v12 = vpack.c.bf16 %v242_v9, %v241_v7  ;;  %v424_v13 = vld [vmem:[%s1462_s0 + $0x38] sm:$0xff]  ;;  %v423_v14 = vld [vmem:[%s1462_s0 + $0x30] sm:$0xff]  ;;  %s1053_s27 = sld [smem:[#allocation5 + $0x1]]  ;;  %s908_s9 = sadd.s32 %s1449_s20, %s1995_s1 }
  0x1c   :  { %v243_v15 = vld [vmem:[%s1471_s30 + $0x20] sm:$0xff]  ;;  %v244_v16 = vld [vmem:[%s1471_s30 + $0x28] sm:$0xff]  ;;  %v428_v22 = vld [vmem:[%s1462_s0 + $0x58] sm:$0xff]  ;;  %s177_s7 = scalar_lea.vmem %s2000_s6, %s1609_s23  ;;  %s190_s10 = scalar_lea.vmem %s2002_s8, %s1609_s23 }
  0x1d   :  { %450 = vperm.xlu1 %1211, %v420_v3   ;;  %440 = vperm.xlu0 %1210, %v418_v4   ;;  %v426_v17 = vld [vmem:[%s1462_s0 + $0x48] sm:$0xff]  ;;  %v425_v18 = vld [vmem:[%s1462_s0 + $0x40] sm:$0xff]  ;;  %v1162_v19 = vpack.c.bf16 %v244_v16, %v243_v15  ;;  %v427_v23 = vld [vmem:[%s1462_s0 + $0x50] sm:$0xff]  ;;  %s1864_s1 = sshll.u32 %s908_s9, 7  ;;  %s1362_s22 = smov [#allocation9]  }
  0x1e   :  { %1155 = vmatprep.subr.bf16.mxu0 %v1154_v8  ;;  %1186 = vmatprep.subr.bf16.mxu1 %v1154_v8  ;;  %v223_v20 = vld [vmem:[%s1487_s15] sm:$0xff]  ;;  %v245_v24 = vld [vmem:[%s1471_s30 + $0x30] sm:$0xff]  ;;  %v246_v25 = vld [vmem:[%s1471_s30 + $0x38] sm:$0xff]  ;;  %s1900_s2 = scalar_lea.hbm %s2007_s13, %s1864_s1 }
  0x1f   :  { %1157 = vmatpush3.bf16.xpose.msra.mxu0 %v1154_v8  ;;  %1194 = vmatpush3.bf16.xpose.msra.mxu1 %v1154_v8  ;;  %v231_v21 = vld [vmem:[%s1487_s15 + $0x40] sm:$0xff]  ;;  %v430_v26 = vld [vmem:[%s1462_s0 + $0x68] sm:$0xff]  ;;  %v1166_v28 = vpack.c.bf16 %v246_v25, %v245_v24  ;;  %v432_v29 = vld [vmem:[%s1462_s0 + $0x78] sm:$0xff] }
  0x20   :  { %1159 = vmatprep.subr.bf16.mxu0 %v1158_v12  ;;  %1187 = vmatprep.subr.bf16.mxu1 %v1158_v12  ;;  %v429_v27 = vld [vmem:[%s1462_s0 + $0x60] sm:$0xff]  ;;  %v431_v30 = vld [vmem:[%s1462_s0 + $0x70] sm:$0xff]  ;;  %v248_v32 = vld [vmem:[%s1471_s30 + $0x48] sm:$0xff]  ;;  %s164_s0 = scalar_lea.vmem %s1998_s4, %s1609_s23  ;;  %s929_s23 = sshll.u32 %s1362_s22, 4  ;;  %s1904_s23 = int_to_ptr.vmem [resolvable:$true] %s929_s23 }
  0x21   :  { %460 = vperm.xlu1 %1211, %v422_v10   ;;  %455 = vperm.xlu0 %1210, %v421_v11   ;;  %v247_v31 = vld [vmem:[%s1471_s30 + $0x40] sm:$0xff]  ;;  %v585_v33 = vld [vmem:[%s1505_s17 + $0x8] sm:$0xff]  ;;  %v587_v36 = vld [vmem:[%s1505_s17 + $0x18] sm:$0xff]  ;;  %s1256_s4 = scalar_lea.vmem %s1904_s23, 2048  ;;  %p1261_p9 = scmp.lt.s32.totalorder %s1904_s23, %s1904_s23 }
  0x22   :  { %1130 = vmatprep.mubr.f32.mxu0 %v223_v20  ;;  %1142 = vmatprep.mubr.f32.mxu1 %v231_v21  ;;  %v584_v34 = vld [vmem:[%s1505_s17] sm:$0xff]  ;;  %v1170_v35 = vpack.c.bf16 %v248_v32, %v247_v31  ;;  %v586_v37 = vld [vmem:[%s1505_s17 + $0x10] sm:$0xff]  ;;  %v250_v39 = vld [vmem:[%s1471_s30 + $0x58] sm:$0xff]  ;;  %p1257_p8 = scmp.ne.s32.totalorder %s1904_s23, %s1256_s4  ;;  %p1262_p10 = scmp.lt.s32.totalorder %s1256_s4, %s1256_s4 }
  0x23   :  { %v249_v38 = vld [vmem:[%s1471_s30 + $0x50] sm:$0xff]  ;;  %v589_v40 = vld [vmem:[%s1505_s17 + $0x28] sm:$0xff]  ;;  %v588_v41 = vld [vmem:[%s1505_s17 + $0x20] sm:$0xff] }
  0x24   :  { %v1174_v42 = vpack.c.bf16 %v250_v39, %v249_v38  ;;  %v591_v43 = vld [vmem:[%s1505_s17 + $0x38] sm:$0xff]  ;;  %v590_v44 = vld [vmem:[%s1505_s17 + $0x30] sm:$0xff]  ;;  %v251_v45 = vld [vmem:[%s1471_s30 + $0x60] sm:$0xff]  ;;  %p1263_p11 = por %p1262_p10, %p1261_p9 }
  0x25   :  { %470 = vperm.xlu1 %1211, %v424_v13   ;;  %465 = vperm.xlu0 %1210, %v423_v14   ;;  %v252_v46 = vld [vmem:[%s1471_s30 + $0x68] sm:$0xff]  ;;  %v592_v48 = vld [vmem:[%s1505_s17 + $0x40] sm:$0xff]  ;;  %v595_v50 = vld [vmem:[%s1505_s17 + $0x58] sm:$0xff] }
  0x26   :  { %v593_v47 = vld [vmem:[%s1505_s17 + $0x48] sm:$0xff]  ;;  %v1178_v49 = vpack.c.bf16 %v252_v46, %v251_v45  ;;  %v594_v51 = vld [vmem:[%s1505_s17 + $0x50] sm:$0xff]  ;;  %v254_v53 = vld [vmem:[%s1471_s30 + $0x78] sm:$0xff]  ;;  %p1264_p12 = pnand %p1263_p11, %p1257_p8 }
  0x27   :  { %1161 = vmatpush3.bf16.xpose.msra.mxu0 %v1158_v12  ;;  %1195 = vmatpush3.bf16.xpose.msra.mxu1 %v1158_v12  ;;  %v253_v52 = vld [vmem:[%s1471_s30 + $0x70] sm:$0xff]  ;;  %v597_v54 = vld [vmem:[%s1505_s17 + $0x68] sm:$0xff]  ;;  %v596_v55 = vld [vmem:[%s1505_s17 + $0x60] sm:$0xff] }
  0x28   :  { %1163 = vmatprep.subr.bf16.mxu0 %v1162_v19  ;;  %1188 = vmatprep.subr.bf16.mxu1 %v1162_v19  ;;  %v1182_v56 = vpack.c.bf16 %v254_v53, %v253_v52  ;;  %v687_v57 = vld [vmem:[%s1533_s19 + $0x8] sm:$0xff]  ;;  %v686_v58 = vld [vmem:[%s1533_s19] sm:$0xff]  ;;  %v689_v59 = vld [vmem:[%s1533_s19 + $0x18] sm:$0xff] }
  0x29   :  { %480 = vperm.xlu1 %1211, %v426_v17   ;;  %475 = vperm.xlu0 %1210, %v425_v18   ;;  %v688_v60 = vld [vmem:[%s1533_s19 + $0x10] sm:$0xff]  ;;  %v691_v61 = vld [vmem:[%s1533_s19 + $0x28] sm:$0xff]  ;;  %v690_v62 = vld [vmem:[%s1533_s19 + $0x20] sm:$0xff] }
  0x2a   :  { %v224_v63 = vld [vmem:[%s1487_s15 + $0x8] sm:$0xff]  ;;  %v225_v1 = vld [vmem:[%s1487_s15 + $0x10] sm:$0xff]  ;;  %v693_v3 = vld [vmem:[%s1533_s19 + $0x38] sm:$0xff] }
  0x2b   :  { %v232_v0 = vld [vmem:[%s1487_s15 + $0x48] sm:$0xff]  ;;  %v233_v2 = vld [vmem:[%s1487_s15 + $0x50] sm:$0xff]  ;;  %v226_v5 = vld [vmem:[%s1487_s15 + $0x18] sm:$0xff] }
  0x2c   :  { %v692_v4 = vld [vmem:[%s1533_s19 + $0x30] sm:$0xff]  ;;  %v234_v6 = vld [vmem:[%s1487_s15 + $0x58] sm:$0xff]  ;;  %v227_v7 = vld [vmem:[%s1487_s15 + $0x20] sm:$0xff] }
  0x2d   :  { %490 = vperm.xlu1 %1211, %v428_v22   ;;  %485 = vperm.xlu0 %1210, %v427_v23   ;;  %v235_v8 = vld [vmem:[%s1487_s15 + $0x60] sm:$0xff]  ;;  %v695_v9 = vld [vmem:[%s1533_s19 + $0x48] sm:$0xff]  ;;  %v229_v13 = vld [vmem:[%s1487_s15 + $0x30] sm:$0xff] }
  0x2e   :  { %v694_v10 = vld [vmem:[%s1533_s19 + $0x40] sm:$0xff]  ;;  %v228_v11 = vld [vmem:[%s1487_s15 + $0x28] sm:$0xff]  ;;  %v237_v14 = vld [vmem:[%s1487_s15 + $0x70] sm:$0xff] }
  0x2f   :  { %1165 = vmatpush3.bf16.xpose.msra.mxu0 %v1162_v19  ;;  %1196 = vmatpush3.bf16.xpose.msra.mxu1 %v1162_v19  ;;  %v236_v12 = vld [vmem:[%s1487_s15 + $0x68] sm:$0xff]  ;;  %v697_v15 = vld [vmem:[%s1533_s19 + $0x58] sm:$0xff]  ;;  %v696_v16 = vld [vmem:[%s1533_s19 + $0x50] sm:$0xff] }
  0x30   :  { %1167 = vmatprep.subr.bf16.mxu0 %v1166_v28  ;;  %1189 = vmatprep.subr.bf16.mxu1 %v1166_v28  ;;  %v230_v17 = vld [vmem:[%s1487_s15 + $0x38] sm:$0xff]  ;;  %v699_v19 = vld [vmem:[%s1533_s19 + $0x68] sm:$0xff]  ;;  %v698_v20 = vld [vmem:[%s1533_s19 + $0x60] sm:$0xff] }
  0x31   :  { %500 = vperm.xlu1 %1211, %v430_v26   ;;  %495 = vperm.xlu0 %1210, %v429_v27   ;;  %v238_v18 = vld [vmem:[%s1487_s15 + $0x78] sm:$0xff]  ;;  %v700_v22 = vld [vmem:[%s1533_s19 + $0x70] sm:$0xff] }
  0x32   :  { %v701_v21 = vld [vmem:[%s1533_s19 + $0x78] sm:$0xff]  ;;  %v598_v24 = vld [vmem:[%s1505_s17 + $0x70] sm:$0xff]  ;;  %s1891_s19 = scalar_lea.hbm %s2006_s12, %s1864_s1 }
  0x33   :  { %v599_v23 = vld [vmem:[%s1505_s17 + $0x78] sm:$0xff]  ;;  %s1877_s17 = scalar_lea.hbm %s2005_s11, %s1864_s1 }
  0x35   :  { %510 = vperm.xlu1 %1211, %v432_v29   ;;  %505 = vperm.xlu0 %1210, %v431_v30  }
  0x37   :  { %1169 = vmatpush3.bf16.xpose.msra.mxu0 %v1166_v28  ;;  %1197 = vmatpush3.bf16.xpose.msra.mxu1 %v1166_v28 }
  0x38   :  { %1171 = vmatprep.subr.bf16.mxu0 %v1170_v35  ;;  %1190 = vmatprep.subr.bf16.mxu1 %v1170_v35 }
  0x39   :  { %605 = vperm.xlu1 %1211, %v585_v33   ;;  %602 = vperm.xlu0 %1210, %v584_v34  }
  0x3d   :  { %611 = vperm.xlu1 %1211, %v587_v36   ;;  %608 = vperm.xlu0 %1210, %v586_v37  }
  0x3f   :  { %1173 = vmatpush3.bf16.xpose.msra.mxu0 %v1170_v35  ;;  %1198 = vmatpush3.bf16.xpose.msra.mxu1 %v1170_v35 }
  0x40   :  { %1175 = vmatprep.subr.bf16.mxu0 %v1174_v42  ;;  %1191 = vmatprep.subr.bf16.mxu1 %v1174_v42 }
  0x41   :  { %617 = vperm.xlu1 %1211, %v589_v40   ;;  %614 = vperm.xlu0 %1210, %v588_v41  }
  0x45   :  { %623 = vperm.xlu1 %1211, %v591_v43   ;;  %620 = vperm.xlu0 %1210, %v590_v44  }
  0x47   :  { %1177 = vmatpush3.bf16.xpose.msra.mxu0 %v1174_v42  ;;  %1199 = vmatpush3.bf16.xpose.msra.mxu1 %v1174_v42 }
  0x48   :  { %1179 = vmatprep.subr.bf16.mxu0 %v1178_v49  ;;  %1192 = vmatprep.subr.bf16.mxu1 %v1178_v49 }
  0x49   :  { %629 = vperm.xlu1 %1211, %v593_v47   ;;  %626 = vperm.xlu0 %1210, %v592_v48  }
  0x4d   :  { %635 = vperm.xlu1 %1211, %v595_v50   ;;  %632 = vperm.xlu0 %1210, %v594_v51  }
  0x4f   :  { %1181 = vmatpush3.bf16.xpose.msra.mxu0 %v1178_v49  ;;  %1200 = vmatpush3.bf16.xpose.msra.mxu1 %v1178_v49 }
  0x50   :  { %1183 = vmatprep.subr.bf16.mxu0 %v1182_v56  ;;  %1193 = vmatprep.subr.bf16.mxu1 %v1182_v56 }
  0x51   :  { %641 = vperm.xlu1 %1211, %v597_v54   ;;  %638 = vperm.xlu0 %1210, %v596_v55  }
  0x55   :  { %707 = vperm.xlu1 %1211, %v687_v57   ;;  %704 = vperm.xlu0 %1210, %v686_v58  }
  0x57   :  { %1185 = vmatpush3.bf16.xpose.msra.mxu0 %v1182_v56  ;;  %1201 = vmatpush3.bf16.xpose.msra.mxu1 %v1182_v56 }
  0x59   :  { %713 = vperm.xlu1 %1211, %v689_v59   ;;  %710 = vperm.xlu0 %1210, %v688_v60  }
  0x5d   :  { %719 = vperm.xlu1 %1211, %v691_v61   ;;  %716 = vperm.xlu0 %1210, %v690_v62   ;;  %v1619_v61 = vld [vmem:[%s164_s0] ss:$0 sm:$0xff]  ;;  %s947_s0 = sshll.u32 %s1364_s26, 4  ;;  %s1914_s0 = int_to_ptr.vmem [resolvable:$true] %s947_s0 }
  0x5e   :  { %1131 = vmatmul.mubr.f32.vlgmr.msra.gmra.mrb[0].mxu0 %v224_v63  ;;  %1143 = vmatmul.mubr.f32.vlgmr.msra.gmra.mrb[0].mxu1 %v232_v0  ;;  %v1625_v0 = vstv %s220_s24  ;;  %s1363_s24 = smov [#allocation8]  }
  0x5f   :  { %1133 = vmatprep.mubr.f32.mxu0 %v225_v1  ;;  %1145 = vmatprep.mubr.f32.mxu1 %v233_v2  ;;  %2012 = vst [vmem:[#allocation18_spill] sm:$0xff] %v1625_v0  ;;  %v1635_v1 = vstv %s1053_s27  ;;  %v1637_v2 = vstv %s1054_s28  ;;  %s911_s25 = sshll.u32 %s1363_s24, 4  ;;  %s1365_s27 = smov [#allocation12]   ;;  %s1912_s25 = int_to_ptr.vmem [resolvable:$true] %s911_s25 }
  0x60   :  { %s965_s28 = sshll.u32 %s1365_s27, 4  ;;  %s1916_s28 = int_to_ptr.vmem [resolvable:$true] %s965_s28 }
  0x61   :  { %725 = vperm.xlu1 %1211, %v693_v3   ;;  %722 = vperm.xlu0 %1210, %v692_v4  }
  0x62   :  { %1134 = vmatmul.mubr.f32.gmra.mrb[2].mxu0 %v226_v5  ;;  %1146 = vmatmul.mubr.f32.gmra.mrb[2].mxu1 %v234_v6  ;;  %v1647_v5 = vld [vmem:[%s177_s7] ss:$0 sm:$0xff]  ;;  %s1910_s7 = scalar_lea.hbm %s2008_s14, %s1864_s1 }
  0x63   :  { %1136 = vmatprep.mubr.f32.mxu0 %v227_v7  ;;  %1148 = vmatprep.mubr.f32.mxu1 %v235_v8 }
  0x65   :  { %731 = vperm.xlu1 %1211, %v695_v9   ;;  %728 = vperm.xlu0 %1210, %v694_v10  }
  0x66   :  { %1137 = vmatmul.mubr.f32.gmra.mrb[4].mxu0 %v228_v11  ;;  %1149 = vmatmul.mubr.f32.gmra.mrb[4].mxu1 %v236_v12 }
  0x67   :  { %1139 = vmatprep.mubr.f32.mxu0 %v229_v13  ;;  %1151 = vmatprep.mubr.f32.mxu1 %v237_v14 }
  0x69   :  { %737 = vperm.xlu1 %1211, %v697_v15   ;;  %734 = vperm.xlu0 %1210, %v696_v16  }
  0x6a   :  { %1140 = vmatmul.mubr.f32.gmra.mrb[6].mxu0 %v230_v17  ;;  %1152 = vmatmul.mubr.f32.gmra.mrb[6].mxu1 %v238_v18 }
  0x6d   :  { %743 = vperm.xlu1 %1211, %v699_v19   ;;  %740 = vperm.xlu0 %1210, %v698_v20  }
  0x71   :  { %749 = vperm.xlu1 %1211, %v701_v21   ;;  %746 = vperm.xlu0 %1210, %v700_v22  }
  0x75   :  { %647 = vperm.xlu1 %1211, %v599_v23   ;;  %644 = vperm.xlu0 %1210, %v598_v24  }
  0x98   :  { %v1567_v25 = vpop.permute.xlu1 %445  ;;  %v1569_v26 = vpop.permute.xlu0 %435 }
  0x9c   :  { %v1571_v27 = vpop.permute.xlu1 %450  ;;  %v1573_v28 = vpop.permute.xlu0 %440 }
  0xa0   :  { %v1575_v29 = vpop.permute.xlu1 %460  ;;  %v1577_v30 = vpop.permute.xlu0 %455 }
  0xa4   :  { %v1579_v31 = vpop.permute.xlu1 %470  ;;  %v1581_v32 = vpop.permute.xlu0 %465 }
  0xa8   :  { %v1583_v33 = vpop.permute.xlu1 %480  ;;  %v1585_v34 = vpop.permute.xlu0 %475 }
  0xac   :  { %v1587_v35 = vpop.permute.xlu1 %490  ;;  %v1589_v36 = vpop.permute.xlu0 %485 }
  0xb0   :  { %v1591_v37 = vpop.permute.xlu1 %500  ;;  %v1593_v38 = vpop.permute.xlu0 %495 }
  0xb4   :  { %v1595_v39 = vpop.permute.xlu1 %510  ;;  %v1597_v40 = vpop.permute.xlu0 %505 }
  0xb8   :  { %v606_v41 = vpop.permute.xlu1 %605  ;;  %v603_v42 = vpop.permute.xlu0 %602 }
  0xb9   :  { %vm654_vm0 = vcmp.eq.s32.totalorder %v606_v41, %v1619_v61  ;;  %vm653_vm1 = vcmp.eq.s32.totalorder %v603_v42, %v1619_v61 }
  0xba   :  { %v1640_v3 = vsel %vm654_vm0, 1.0, %v1625_v0  ;;  %v1643_v4 = vsel %vm653_vm1, 1.0, %v1625_v0 }
  0xbc   :  { %v612_v43 = vpop.permute.xlu1 %611  ;;  %v609_v44 = vpop.permute.xlu0 %608 }
  0xbd   :  { %vm656_vm2 = vcmp.eq.s32.totalorder %v612_v43, %v1619_v61  ;;  %vm655_vm3 = vcmp.eq.s32.totalorder %v609_v44, %v1619_v61 }
  0xbe   :  { %v1650_v8 = vsel %vm656_vm2, 1.0, %v1625_v0  ;;  %v1653_v9 = vsel %vm655_vm3, 1.0, %v1625_v0 }
  0xc0   :  { %v618_v45 = vpop.permute.xlu1 %617  ;;  %v615_v46 = vpop.permute.xlu0 %614 }
  0xc1   :  { %vm658_vm4 = vcmp.eq.s32.totalorder %v618_v45, %v1619_v61  ;;  %vm657_vm5 = vcmp.eq.s32.totalorder %v615_v46, %v1619_v61 }
  0xc2   :  { %v1662_v10 = vsel %vm658_vm4, 1.0, %v1625_v0  ;;  %v1665_v11 = vsel %vm657_vm5, 1.0, %v1625_v0 }
  0xc4   :  { %v624_v47 = vpop.permute.xlu1 %623  ;;  %v1599_v48 = vpop.permute.xlu0 %620 }
  0xc5   :  { %vm660_vm6 = vcmp.eq.s32.totalorder %v624_v47, %v1619_v61 }
  0xc6   :  { %v1670_v12 = vsel %vm660_vm6, 1.0, %v1625_v0 }
  0xc7   :  { %2013 = vst [vmem:[#allocation19_spill] sm:$0xff] %v1670_v12 }
  0xc8   :  { %v630_v49 = vpop.permute.xlu1 %629  ;;  %v627_v50 = vpop.permute.xlu0 %626 }
  0xc9   :  { %vm662_vm7 = vcmp.eq.s32.totalorder %v630_v49, %v1619_v61  ;;  %vm661_vm8 = vcmp.eq.s32.totalorder %v627_v50, %v1619_v61  ;;  %v1727_v49 = vld [vmem:[%s190_s10] ss:$0 sm:$0xff] }
  0xca   :  { %v1673_v13 = vsel %vm662_vm7, 1.0, %v1625_v0  ;;  %v1678_v14 = vsel %vm661_vm8, 1.0, %v1625_v0  ;;  %vm659_vm8 = vcmp.eq.s32.totalorder %v1599_v48, %v1619_v61 }
  0xcc   :  { %v636_v51 = vpop.permute.xlu1 %635  ;;  %v633_v52 = vpop.permute.xlu0 %632 }
  0xcd   :  { %vm664_vm9 = vcmp.eq.s32.totalorder %v636_v51, %v1619_v61  ;;  %vm663_vm10 = vcmp.eq.s32.totalorder %v633_v52, %v1619_v61 }
  0xce   :  { %v1681_v15 = vsel %vm664_vm9, 1.0, %v1625_v0  ;;  %v1684_v16 = vsel %vm663_vm10, 1.0, %v1625_v0 }
  0xd0   :  { %v642_v53 = vpop.permute.xlu1 %641  ;;  %v639_v54 = vpop.permute.xlu0 %638 }
  0xd1   :  { %vm666_vm11 = vcmp.eq.s32.totalorder %v642_v53, %v1619_v61  ;;  %vm665_vm12 = vcmp.eq.s32.totalorder %v639_v54, %v1619_v61 }
  0xd2   :  { %v1687_v17 = vsel %vm666_vm11, 1.0, %v1625_v0  ;;  %v1690_v18 = vsel %vm665_vm12, 1.0, %v1625_v0 }
  0xd4   :  { %v708_v55 = vpop.permute.xlu1 %707  ;;  %v705_v56 = vpop.permute.xlu0 %704 }
  0xd5   :  { %vm756_vm13 = vcmp.eq.s32.totalorder %v708_v55, %v1647_v5  ;;  %vm755_vm14 = vcmp.eq.s32.totalorder %v705_v56, %v1647_v5 }
  0xd6   :  { %v1693_v19 = vsel %vm756_vm13, 1.0, %v1635_v1  ;;  %v1704_v22 = vsel %vm755_vm14, 1.0, %v1635_v1 }
  0xd8   :  { %v714_v57 = vpop.permute.xlu1 %713  ;;  %v1604_v58 = vpop.permute.xlu0 %710 }
  0xd9   :  { %vm758_vm15 = vcmp.eq.s32.totalorder %v714_v57, %v1647_v5  ;;  %vm757_vm0 = vcmp.eq.s32.totalorder %v1604_v58, %v1647_v5 }
  0xda   :  { %v1707_v23 = vsel %vm758_vm15, 1.0, %v1635_v1  ;;  %v1719_v46 = vsel %vm757_vm0, 1.0, %v1635_v1 }
  0xdc   :  { %v1611_v59 = vpop.permute.xlu1 %719  ;;  %v1613_v60 = vpop.permute.xlu0 %716 }
  0xdd   :  { %vm760_vm1 = vcmp.eq.s32.totalorder %v1611_v59, %v1647_v5  ;;  %vm759_vm7 = vcmp.eq.s32.totalorder %v1613_v60, %v1647_v5 }
  0xde   :  { %v1725_v47 = vsel %vm760_vm1, 1.0, %v1635_v1 }
  0xe0   :  { %v1621_v62 = vpop.permute.xlu1 %725  ;;  %v1623_v63 = vpop.permute.xlu0 %722 }
  0xe1   :  { %vm762_vm10 = vcmp.eq.s32.totalorder %v1621_v62, %v1647_v5  ;;  %vm761_vm12 = vcmp.eq.s32.totalorder %v1623_v63, %v1647_v5 }
  0xe4   :  { %v732_v6 = vpop.permute.xlu1 %731  ;;  %v729_v7 = vpop.permute.xlu0 %728 }
  0xe5   :  { %vm764_vm2 = vcmp.eq.s32.totalorder %v732_v6, %v1647_v5  ;;  %vm763_vm3 = vcmp.eq.s32.totalorder %v729_v7, %v1647_v5 }
  0xe6   :  { %v1732_v52 = vsel %vm764_vm2, 1.0, %v1635_v1  ;;  %v1735_v53 = vsel %vm763_vm3, 1.0, %v1635_v1 }
  0xe8   :  { %v738_v20 = vpop.permute.xlu1 %737  ;;  %v735_v21 = vpop.permute.xlu0 %734 }
  0xe9   :  { %vm766_vm4 = vcmp.eq.s32.totalorder %v738_v20, %v1647_v5  ;;  %vm765_vm5 = vcmp.eq.s32.totalorder %v735_v21, %v1647_v5 }
  0xea   :  { %v1740_v56 = vsel %vm766_vm4, 1.0, %v1635_v1  ;;  %v1743_v57 = vsel %vm765_vm5, 1.0, %v1635_v1 }
 0x131   :  { %v1132_v24 = vpop.f32.mrb[0].mxu0  ;;  %v1144_v41 = vpop.f32.mrb[0].mxu1 }
 0x132   :  { %v402_v42 = vmul.f32 %v1132_v24, %v1637_v2  ;;  %v410_v43 = vmul.f32 %v1144_v41, %v1637_v2  ;;  %v321_v44 = vpop.f32.mrb[1].mxu0  ;;  %v361_v45 = vpop.f32.mrb[1].mxu1 }
 0x133   :  { %v401_v50 = vmul.f32 %v1637_v2, %v321_v44  ;;  %v409_v51 = vmul.f32 %v1637_v2, %v361_v45 }
 0x134   :  { %v514_v54 = vadd.f32 %v1573_v28, %v402_v42  ;;  %v522_v55 = vadd.f32 %v1583_v33, %v410_v43  ;;  %v744_v42 = vpop.permute.xlu1 %743 }
 0x135   :  { %v513_v58 = vadd.f32 %v1569_v26, %v401_v50  ;;  %v521_v59 = vadd.f32 %v1585_v34, %v409_v51  ;;  %v1135_v6 = vpop.f32.mrb[2].mxu0  ;;  %v1147_v7 = vpop.f32.mrb[2].mxu1  ;;  %vm768_vm6 = vcmp.eq.s32.totalorder %v744_v42, %v1647_v5 }
 0x136   :  { %v537_v20 = vadd.f32 %v1727_v49, %v514_v54  ;;  %v545_v21 = vadd.f32 %v1727_v49, %v522_v55  ;;  %v404_v28 = vmul.f32 %v1135_v6, %v1637_v2  ;;  %v412_v33 = vmul.f32 %v1147_v7, %v1637_v2  ;;  %v331_v24 = vpop.f32.mrb[3].mxu0  ;;  %v371_v41 = vpop.f32.mrb[3].mxu1 }
 0x137   :  { %v536_v43 = vadd.f32 %v1727_v49, %v513_v58  ;;  %v544_v44 = vadd.f32 %v1727_v49, %v521_v59  ;;  %v403_v26 = vmul.f32 %v1637_v2, %v331_v24  ;;  %v411_v34 = vmul.f32 %v1637_v2, %v371_v41 }
 0x138   :  { %v554_v45 = vmul.f32 1.442695, %v537_v20  ;;  %v570_v50 = vmul.f32 1.442695, %v545_v21  ;;  %v516_v51 = vadd.f32 %v1571_v27, %v404_v28  ;;  %v524_v54 = vadd.f32 %v1587_v35, %v412_v33 }
 0x139   :  { %v552_v55 = vmul.f32 1.442695, %v536_v43  ;;  %v568_v6 = vmul.f32 1.442695, %v544_v44  ;;  %v515_v7 = vadd.f32 %v1567_v25, %v403_v26  ;;  %v523_v58 = vadd.f32 %v1589_v36, %v411_v34  ;;  %v1138_v12 = vpop.f32.mrb[4].mxu0  ;;  %v1150_v59 = vpop.f32.mrb[4].mxu1 }
 0x13a   :  { %1212 = vpow2.f32 %v554_v45  ;;  %v539_v24 = vadd.f32 %v1727_v49, %v516_v51  ;;  %v547_v41 = vadd.f32 %v1727_v49, %v524_v54  ;;  %v406_v20 = vmul.f32 %v1138_v12, %v1637_v2  ;;  %v341_v21 = vpop.f32.mrb[5].mxu0  ;;  %v381_v0 = vpop.f32.mrb[5].mxu1 }
 0x13b   :  { %1214 = vpow2.f32 %v570_v50  ;;  %v538_v27 = vadd.f32 %v1727_v49, %v515_v7  ;;  %v546_v35 = vadd.f32 %v1727_v49, %v523_v58  ;;  %v414_v25 = vmul.f32 %v1150_v59, %v1637_v2 }
 0x13c   :  { %1216 = vpow2.f32 %v552_v55  ;;  %v558_v36 = vmul.f32 1.442695, %v539_v24  ;;  %v574_v28 = vmul.f32 1.442695, %v547_v41  ;;  %v518_v33 = vadd.f32 %v1575_v29, %v406_v20 }
 0x13d   :  { %1218 = vpow2.f32 %v568_v6  ;;  %v556_v43 = vmul.f32 1.442695, %v538_v27  ;;  %v572_v44 = vmul.f32 1.442695, %v546_v35  ;;  %v526_v26 = vadd.f32 %v1591_v37, %v414_v25  ;;  %v1141_v12 = vpop.f32.mrb[6].mxu0  ;;  %v1153_v34 = vpop.f32.mrb[6].mxu1 }
 0x13e   :  { %1220 = vpow2.f32 %v558_v36  ;;  %v541_v45 = vadd.f32 %v1727_v49, %v518_v33  ;;  %v405_v50 = vmul.f32 %v1637_v2, %v341_v21  ;;  %v413_v51 = vmul.f32 %v1637_v2, %v381_v0  ;;  %v351_v54 = vpop.f32.mrb[7].mxu0  ;;  %v391_v55 = vpop.f32.mrb[7].mxu1 }
 0x13f   :  { %1222 = vpow2.f32 %v574_v28  ;;  %v549_v7 = vadd.f32 %v1727_v49, %v526_v26  ;;  %v408_v29 = vmul.f32 %v1141_v12, %v1637_v2  ;;  %v416_v6 = vmul.f32 %v1153_v34, %v1637_v2 }
 0x140   :  { %1224 = vpow2.f32 %v556_v43  ;;  %v562_v37 = vmul.f32 1.442695, %v541_v45  ;;  %v517_v58 = vadd.f32 %v1577_v30, %v405_v50  ;;  %v525_v59 = vadd.f32 %v1593_v38, %v413_v51  ;;  %v1797_v50 = vpop.permute.xlu1 %749 }
 0x141   :  { %1226 = vpow2.f32 %v572_v44  ;;  %v578_v24 = vmul.f32 1.442695, %v549_v7  ;;  %v520_v41 = vadd.f32 %v1579_v31, %v408_v29  ;;  %v528_v0 = vadd.f32 %v1595_v39, %v416_v6 }
 0x142   :  { %1228 = vpow2.f32 %v562_v37  ;;  %v540_v20 = vadd.f32 %v1727_v49, %v517_v58  ;;  %v548_v21 = vadd.f32 %v1727_v49, %v525_v59  ;;  %v407_v27 = vmul.f32 %v1637_v2, %v351_v54  ;;  %v1805_v37 = vpop.permute.xlu0 %740 }
 0x143   :  { %v1784_v35 = vsel %vm768_vm6, 1.0, %v1635_v1  ;;  %1230 = vpow2.f32 %v578_v24  ;;  %v543_v30 = vadd.f32 %v1727_v49, %v520_v41  ;;  %v551_v38 = vadd.f32 %v1727_v49, %v528_v0 }
 0x144   :  { %v1213_v31 = vpop.eup %1212  ;;  %v560_v25 = vmul.f32 1.442695, %v540_v20  ;;  %v576_v39 = vmul.f32 1.442695, %v548_v21  ;;  %v519_v36 = vadd.f32 %v1581_v32, %v407_v27  ;;  %v415_v28 = vmul.f32 %v1637_v2, %v391_v55 }
 0x145   :  { %v1215_v33 = vpop.eup %1214  ;;  %v789_v42 = vmul.f32 %v1213_v31, %v1693_v19  ;;  %805 = vst [vmem:[#allocation11 + $0x8] sm:$0xff] %v1213_v31  ;;  %v837_v43 = vmul.f32 %v1213_v31, %v1640_v3  ;;  %v566_v44 = vmul.f32 1.442695, %v543_v30  ;;  %v582_v26 = vmul.f32 1.442695, %v551_v38  ;;  %v648_v38 = vpop.permute.xlu1 %647 }
 0x146   :  { %v1217_v12 = vpop.eup %1216  ;;  %v797_v34 = vmul.f32 %v1215_v33, %v1732_v52  ;;  %813 = vst [vmem:[#allocation11 + $0x48] sm:$0xff] %v1215_v33  ;;  %v845_v45 = vmul.f32 %v1215_v33, %v1673_v13  ;;  %1232 = vpow2.f32 %v560_v25  ;;  %v542_v32 = vadd.f32 %v1727_v49, %v519_v36 }
 0x147   :  { %v1219_v2 = vpop.eup %1218  ;;  %821 = vst [vmem:[#allocation8 + $0x8] sm:$0xff] %v789_v42  ;;  %853 = vst [vmem:[#allocation9 + $0x8] sm:$0xff] %v837_v43  ;;  %v869_v19 = vmul.f32 %v789_v42, %v1640_v3  ;;  %v788_v51 = vmul.f32 %v1217_v12, %v1704_v22  ;;  %v836_v54 = vmul.f32 %v1217_v12, %v1643_v4  ;;  %1234 = vpow2.f32 %v576_v39 }
 0x148   :  { %804 = vst [vmem:[#allocation11] sm:$0xff] %v1217_v12  ;;  %v1221_v52 = vpop.eup %1220  ;;  %829 = vst [vmem:[#allocation8 + $0x48] sm:$0xff] %v797_v34  ;;  %v877_v55 = vmul.f32 %v797_v34, %v1673_v13  ;;  %v796_v7 = vmul.f32 %v1219_v2, %v1735_v53  ;;  %v844_v29 = vmul.f32 %v1219_v2, %v1678_v14  ;;  %1236 = vpow2.f32 %v566_v44  ;;  %v2014_v34 = vld [vmem:[#allocation18_spill] sm:$0xff] }
 0x149   :  { %861 = vst [vmem:[#allocation9 + $0x48] sm:$0xff] %v845_v45  ;;  %812 = vst [vmem:[#allocation11 + $0x40] sm:$0xff] %v1219_v2  ;;  %v1223_v6 = vpop.eup %1222  ;;  %v868_v3 = vmul.f32 %v788_v51, %v1643_v4  ;;  %v791_v22 = vmul.f32 %v1221_v52, %v1707_v23  ;;  %v839_v58 = vmul.f32 %v1221_v52, %v1650_v8  ;;  %1238 = vpow2.f32 %v582_v26  ;;  %v2015_v2 = vld [vmem:[#allocation19_spill] sm:$0xff] }
 0x14a   :  { %885 = vst [vmem:[#allocation12 + $0x8] sm:$0xff] %v869_v19  ;;  %820 = vst [vmem:[#allocation8] sm:$0xff] %v788_v51  ;;  %v1225_v13 = vpop.eup %1224  ;;  %v876_v53 = vmul.f32 %v796_v7, %v1678_v14  ;;  %v799_v59 = vmul.f32 %v1223_v6, %v1740_v56  ;;  %v847_v24 = vmul.f32 %v1223_v6, %v1681_v15  ;;  %v564_v41 = vmul.f32 1.442695, %v542_v32 }
 0x14b   :  { %852 = vst [vmem:[#allocation9] sm:$0xff] %v836_v54  ;;  %807 = vst [vmem:[#allocation11 + $0x18] sm:$0xff] %v1221_v52  ;;  %v1227_v0 = vpop.eup %1226  ;;  %v871_v4 = vmul.f32 %v791_v22, %v1650_v8  ;;  %v790_v23 = vmul.f32 %v1225_v13, %v1719_v46  ;;  %v838_v14 = vmul.f32 %v1225_v13, %v1653_v9  ;;  %v779_v43 = vsel %vm762_vm10, 1.0, %v1635_v1 }
 0x14c   :  { %893 = vst [vmem:[#allocation12 + $0x48] sm:$0xff] %v877_v55  ;;  %828 = vst [vmem:[#allocation8 + $0x40] sm:$0xff] %v796_v7  ;;  %v527_v56 = vadd.f32 %v1597_v40, %v415_v28  ;;  %v1229_v20 = vpop.eup %1228  ;;  %v879_v21 = vmul.f32 %v799_v59, %v1681_v15  ;;  %v798_v27 = vmul.f32 %v1227_v0, %v1743_v57  ;;  %1240 = vpow2.f32 %v564_v41 }
 0x14d   :  { %860 = vst [vmem:[#allocation9 + $0x40] sm:$0xff] %v844_v29  ;;  %815 = vst [vmem:[#allocation11 + $0x58] sm:$0xff] %v1223_v6  ;;  %v846_v30 = vmul.f32 %v1227_v0, %v1684_v16  ;;  %v1231_v8 = vpop.eup %1230  ;;  %v870_v46 = vmul.f32 %v790_v23, %v1653_v9  ;;  %v793_v40 = vmul.f32 %v1229_v20, %v1725_v47  ;;  %v1835_v47 = vpop.permute.xlu0 %746  ;;  %v778_v7 = vsel %vm761_vm12, 1.0, %v1635_v1 }
 0x14e   :  { %884 = vst [vmem:[#allocation12] sm:$0xff] %v868_v3  ;;  %823 = vst [vmem:[#allocation8 + $0x18] sm:$0xff] %v791_v22  ;;  %v841_v31 = vmul.f32 %v1229_v20, %v1662_v10  ;;  %v550_v15 = vadd.f32 %v1727_v49, %v527_v56  ;;  %vm767_vm9 = vcmp.eq.s32.totalorder %v1805_v37, %v1647_v5 }
 0x14f   :  { %855 = vst [vmem:[#allocation9 + $0x18] sm:$0xff] %v839_v58  ;;  %806 = vst [vmem:[#allocation11 + $0x10] sm:$0xff] %v1225_v13  ;;  %v878_v57 = vmul.f32 %v798_v27, %v1684_v16  ;;  %v801_v25 = vmul.f32 %v1231_v8, %v1784_v35  ;;  %v849_v9 = vmul.f32 %v1231_v8, %v1687_v17  ;;  %v776_v35 = vsel %vm759_vm7, 1.0, %v1635_v1 }
 0x150   :  { %892 = vst [vmem:[#allocation12 + $0x40] sm:$0xff] %v876_v53  ;;  %831 = vst [vmem:[#allocation8 + $0x58] sm:$0xff] %v799_v59  ;;  %vm770_vm11 = vcmp.eq.s32.totalorder %v1797_v50, %v1647_v5  ;;  %v873_v49 = vmul.f32 %v793_v40, %v1662_v10  ;;  %v580_v39 = vmul.f32 1.442695, %v550_v15  ;;  %v1233_v16 = vpop.eup %1232  ;;  %vm668_vm13 = vcmp.eq.s32.totalorder %v648_v38, %v1619_v61 }
 0x151   :  { %863 = vst [vmem:[#allocation9 + $0x58] sm:$0xff] %v847_v24  ;;  %814 = vst [vmem:[#allocation11 + $0x50] sm:$0xff] %v1227_v0  ;;  %v881_v10 = vmul.f32 %v801_v25, %v1687_v17  ;;  %v1235_v36 = vpop.eup %1234  ;;  %v784_v28 = vsel %vm767_vm9, 1.0, %v1635_v1  ;;  %v792_v33 = vmul.f32 %v1233_v16, %v776_v35  ;;  %v840_v60 = vmul.f32 %v1233_v16, %v1665_v11  ;;  %v645_v52 = vpop.permute.xlu0 %644 }
 0x152   :  { %887 = vst [vmem:[#allocation12 + $0x18] sm:$0xff] %v871_v4  ;;  %822 = vst [vmem:[#allocation8 + $0x10] sm:$0xff] %v790_v23  ;;  %1242 = vpow2.f32 %v580_v39  ;;  %v1237_v42 = vpop.eup %1236  ;;  %v787_v17 = vsel %vm770_vm11, 1.0, %v1635_v1  ;;  %v800_v44 = vmul.f32 %v1235_v36, %v784_v28  ;;  %v848_v26 = vmul.f32 %v1235_v36, %v1690_v18 }
 0x153   :  { %854 = vst [vmem:[#allocation9 + $0x10] sm:$0xff] %v838_v14  ;;  %809 = vst [vmem:[#allocation11 + $0x28] sm:$0xff] %v1229_v20  ;;  %v1239_v12 = vpop.eup %1238  ;;  %v685_v45 = vsel %vm668_vm13, 1.0, %v2014_v34  ;;  %v872_v62 = vmul.f32 %v792_v33, %v1665_v11  ;;  %v795_v32 = vmul.f32 %v1237_v42, %v779_v43  ;;  %v843_v50 = vmul.f32 %v1237_v42, %v2015_v2 }
 0x154   :  { %895 = vst [vmem:[#allocation12 + $0x58] sm:$0xff] %v879_v21  ;;  %830 = vst [vmem:[#allocation8 + $0x50] sm:$0xff] %v798_v27  ;;  %v880_v19 = vmul.f32 %v800_v44, %v1690_v18  ;;  %v803_v51 = vmul.f32 %v1239_v12, %v787_v17  ;;  %v851_v54 = vmul.f32 %v1239_v12, %v685_v45  ;;  %v676_v18 = vsel %vm659_vm8, 1.0, %v2014_v34 }
 0x155   :  { %862 = vst [vmem:[#allocation9 + $0x50] sm:$0xff] %v846_v30  ;;  %817 = vst [vmem:[#allocation11 + $0x68] sm:$0xff] %v1231_v8  ;;  %v875_v55 = vmul.f32 %v795_v32, %v2015_v2  ;;  %vm769_vm14 = vcmp.eq.s32.totalorder %v1835_v47, %v1647_v5  ;;  %vm667_vm15 = vcmp.eq.s32.totalorder %v645_v52, %v1619_v61 }
 0x156   :  { %886 = vst [vmem:[#allocation12 + $0x10] sm:$0xff] %v870_v46  ;;  %825 = vst [vmem:[#allocation8 + $0x28] sm:$0xff] %v793_v40  ;;  %v1241_v11 = vpop.eup %1240  ;;  %v883_v29 = vmul.f32 %v803_v51, %v685_v45  ;;  %v786_v3 = vsel %vm769_vm14, 1.0, %v1635_v1  ;;  %v684_v5 = vsel %vm667_vm15, 1.0, %v2014_v34 }
 0x157   :  { %857 = vst [vmem:[#allocation9 + $0x28] sm:$0xff] %v841_v31  ;;  %894 = vst [vmem:[#allocation12 + $0x50] sm:$0xff] %v878_v57  ;;  %v794_v6 = vmul.f32 %v1241_v11, %v778_v7  ;;  %v842_v37 = vmul.f32 %v1241_v11, %v676_v18 }
 0x158   :  { %833 = vst [vmem:[#allocation8 + $0x68] sm:$0xff] %v801_v25  ;;  %865 = vst [vmem:[#allocation9 + $0x68] sm:$0xff] %v849_v9 }
 0x159   :  { %889 = vst [vmem:[#allocation12 + $0x28] sm:$0xff] %v873_v49  ;;  %808 = vst [vmem:[#allocation11 + $0x20] sm:$0xff] %v1233_v16  ;;  %v874_v48 = vmul.f32 %v794_v6, %v676_v18 }
 0x15a   :  { %897 = vst [vmem:[#allocation12 + $0x68] sm:$0xff] %v881_v10  ;;  %816 = vst [vmem:[#allocation11 + $0x60] sm:$0xff] %v1235_v36 }
 0x15b   :  { %824 = vst [vmem:[#allocation8 + $0x20] sm:$0xff] %v792_v33  ;;  %856 = vst [vmem:[#allocation9 + $0x20] sm:$0xff] %v840_v60 }
 0x15c   :  { %811 = vst [vmem:[#allocation11 + $0x38] sm:$0xff] %v1237_v42  ;;  %832 = vst [vmem:[#allocation8 + $0x60] sm:$0xff] %v800_v44  ;;  %v1243_v63 = vpop.eup %1242 }
 0x15d   :  { %864 = vst [vmem:[#allocation9 + $0x60] sm:$0xff] %v848_v26  ;;  %819 = vst [vmem:[#allocation11 + $0x78] sm:$0xff] %v1239_v12  ;;  %v802_v61 = vmul.f32 %v1243_v63, %v786_v3  ;;  %v850_v22 = vmul.f32 %v1243_v63, %v684_v5 }
 0x15e   :  { %888 = vst [vmem:[#allocation12 + $0x20] sm:$0xff] %v872_v62  ;;  %827 = vst [vmem:[#allocation8 + $0x38] sm:$0xff] %v795_v32 }
 0x15f   :  { %859 = vst [vmem:[#allocation9 + $0x38] sm:$0xff] %v843_v50  ;;  %896 = vst [vmem:[#allocation12 + $0x60] sm:$0xff] %v880_v19  ;;  %v882_v1 = vmul.f32 %v802_v61, %v684_v5 }
 0x160   :  { %835 = vst [vmem:[#allocation8 + $0x78] sm:$0xff] %v803_v51  ;;  %867 = vst [vmem:[#allocation9 + $0x78] sm:$0xff] %v851_v54 }
 0x161   :  { %891 = vst [vmem:[#allocation12 + $0x38] sm:$0xff] %v875_v55  ;;  %810 = vst [vmem:[#allocation11 + $0x30] sm:$0xff] %v1241_v11 }
 0x162   :  { %899 = vst [vmem:[#allocation12 + $0x78] sm:$0xff] %v883_v29  ;;  %826 = vst [vmem:[#allocation8 + $0x30] sm:$0xff] %v794_v6 }
 0x163   :  { %858 = vst [vmem:[#allocation9 + $0x30] sm:$0xff] %v842_v37  ;;  %890 = vst [vmem:[#allocation12 + $0x30] sm:$0xff] %v874_v48 }
 0x164   :  { %818 = vst [vmem:[#allocation11 + $0x70] sm:$0xff] %v1243_v63  ;;  %834 = vst [vmem:[#allocation8 + $0x70] sm:$0xff] %v802_v61 }
 0x165   :  { %866 = vst [vmem:[#allocation9 + $0x70] sm:$0xff] %v850_v22 }
 0x166   :  { %1267 = shalt.err (!%p1264_p12)
}
 0x167   :  { %s1268_s6 = scalar_lea.hbm %s1891_s19, 2048  ;;  %s1270_s15 = scalar_lea.hbm %s2006_s12, 2048 }
 0x168   :  { %p1269_p13 = scmp.ne.s32.totalorder %s1891_s19, %s1268_s6  ;;  %p1271_p0 = scmp.lt.u32.totalorder %s1891_s19, %s2006_s12 }
 0x169   :  { %p1272_p1 = scmp.lt.u32.totalorder %s1270_s15, %s1268_s6  ;;  %p1274_p3 = scmp.lt.u32.totalorder %s1268_s6, %s1891_s19 }
 0x16b   :  { %p1273_p2 = por %p1272_p1, %p1271_p0 }
 0x16d   :  { %p1275_p4 = por %p1274_p3, %p1273_p2 }
 0x16f   :  { %p1276_p5 = pnand %p1275_p4, %p1269_p13 }
 0x171   :  { %1279 = shalt.err (!%p1276_p5)
}
 0x172   :  { %s1366_s20 = smov 128   ;;  %s1367_s16 = smov 8   ;;  %898 = vst [vmem:[#allocation12 + $0x70] sm:$0xff] %v882_v1 }
 0x173   :  { %935 = dma.vmem_to_hbm [thread:$0]  %s1904_s23, 2048, %s1891_s19, [#allocation10], %s1366_s20, %s1366_s20, %s1367_s16  }
 0x174   :  { %s1280_s3 = scalar_lea.vmem %s1912_s25, 2048  ;;  %p1285_p7 = scmp.lt.s32.totalorder %s1912_s25, %s1912_s25 }
 0x175   :  { %p1281_p6 = scmp.ne.s32.totalorder %s1912_s25, %s1280_s3  ;;  %p1286_p8 = scmp.lt.s32.totalorder %s1280_s3, %s1280_s3 }
 0x177   :  { %p1287_p9 = por %p1286_p8, %p1285_p7 }
 0x179   :  { %p1288_p10 = pnand %p1287_p9, %p1281_p6 }
 0x17b   :  { %1291 = shalt.err (!%p1288_p10)
}
 0x17c   :  { %s1292_s12 = scalar_lea.hbm %s1877_s17, 2048  ;;  %s1294_s21 = scalar_lea.hbm %s2005_s11, 2048 }
 0x17d   :  { %p1293_p11 = scmp.ne.s32.totalorder %s1877_s17, %s1292_s12  ;;  %p1295_p12 = scmp.lt.u32.totalorder %s1877_s17, %s2005_s11 }
 0x17e   :  { %p1296_p13 = scmp.lt.u32.totalorder %s1294_s21, %s1292_s12  ;;  %p1298_p1 = scmp.lt.u32.totalorder %s1292_s12, %s1877_s17 }
 0x180   :  { %p1297_p0 = por %p1296_p13, %p1295_p12 }
 0x182   :  { %p1299_p2 = por %p1298_p1, %p1297_p0 }
 0x184   :  { %p1300_p3 = pnand %p1299_p2, %p1293_p11 }
 0x186   :  { %1303 = shalt.err (!%p1300_p3)
}
 0x187   :  { %917 = dma.vmem_to_hbm [thread:$0]  %s1912_s25, 2048, %s1877_s17, [#allocation6], %s1366_s20, %s1366_s20, %s1367_s16  }
 0x188   :  { %s1304_s23 = scalar_lea.vmem %s1914_s0, 2048  ;;  %p1309_p5 = scmp.lt.s32.totalorder %s1914_s0, %s1914_s0 }
 0x189   :  { %p1305_p4 = scmp.ne.s32.totalorder %s1914_s0, %s1304_s23  ;;  %p1310_p6 = scmp.lt.s32.totalorder %s1304_s23, %s1304_s23 }
 0x18b   :  { %p1311_p7 = por %p1310_p6, %p1309_p5 }
 0x18d   :  { %p1312_p8 = pnand %p1311_p7, %p1305_p4 }
 0x18f   :  { %1315 = shalt.err (!%p1312_p8)
}
 0x190   :  { %s1316_s11 = scalar_lea.hbm %s1900_s2, 2048  ;;  %s1318_s27 = scalar_lea.hbm %s2007_s13, 2048 }
 0x191   :  { %p1317_p9 = scmp.ne.s32.totalorder %s1900_s2, %s1316_s11  ;;  %p1319_p10 = scmp.lt.u32.totalorder %s1900_s2, %s2007_s13 }
 0x192   :  { %p1320_p11 = scmp.lt.u32.totalorder %s1318_s27, %s1316_s11  ;;  %p1322_p13 = scmp.lt.u32.totalorder %s1316_s11, %s1900_s2 }
 0x194   :  { %p1321_p12 = por %p1320_p11, %p1319_p10 }
 0x196   :  { %p1323_p0 = por %p1322_p13, %p1321_p12 }
 0x198   :  { %p1324_p1 = pnand %p1323_p0, %p1317_p9 }
 0x19a   :  { %1327 = shalt.err (!%p1324_p1)
}
 0x19b   :  { %953 = dma.vmem_to_hbm [thread:$0]  %s1914_s0, 2048, %s1900_s2, [#allocation10], %s1366_s20, %s1366_s20, %s1367_s16  }
 0x19c   :  { %s1328_s25 = scalar_lea.vmem %s1916_s28, 2048  ;;  %p1333_p3 = scmp.lt.s32.totalorder %s1916_s28, %s1916_s28 }
 0x19d   :  { %p1329_p2 = scmp.ne.s32.totalorder %s1916_s28, %s1328_s25  ;;  %p1334_p4 = scmp.lt.s32.totalorder %s1328_s25, %s1328_s25 }
 0x19f   :  { %p1335_p5 = por %p1334_p4, %p1333_p3 }
 0x1a1   :  { %p1336_p6 = pnand %p1335_p5, %p1329_p2 }
 0x1a3   :  { %1339 = shalt.err (!%p1336_p6)
}
 0x1a4   :  { %s1340_s13 = scalar_lea.hbm %s1910_s7, 2048  ;;  %s1342_s6 = scalar_lea.hbm %s2008_s14, 2048 }
 0x1a5   :  { %p1341_p7 = scmp.ne.s32.totalorder %s1910_s7, %s1340_s13  ;;  %p1343_p8 = scmp.lt.u32.totalorder %s1910_s7, %s2008_s14 }
 0x1a6   :  { %p1344_p9 = scmp.lt.u32.totalorder %s1342_s6, %s1340_s13  ;;  %p1346_p11 = scmp.lt.u32.totalorder %s1340_s13, %s1910_s7 }
 0x1a8   :  { %p1345_p10 = por %p1344_p9, %p1343_p8 }
 0x1aa   :  { %p1347_p12 = por %p1346_p11, %p1345_p10 }
 0x1ac   :  { %p1348_p13 = pnand %p1347_p12, %p1341_p7 }
 0x1ae   :  { %1351 = shalt.err (!%p1348_p13)
}
 0x1af   :  { %971 = dma.vmem_to_hbm [thread:$0]  %s1916_s28, 2048, %s1910_s7, [#allocation13], %s1366_s20, %s1366_s20, %s1367_s16  }
 0x1b0   :  { %1354 = dma.done.wait [#allocation6], 2048  }
 0x1b1   :  { %1355 = vsyncadd [#allocation6], 4294965248 }
 0x1b2   :  { %1356 = dma.done.wait [#allocation10], 4096  }
 0x1b3   :  { %1357 = vsyncadd [#allocation10], 4294963200 }
 0x1b4   :  { %1358 = dma.done.wait [#allocation13], 2048  }
 0x1b5   :  { %1359 = vsyncadd [#allocation13], 4294965248 }
 0x1b6   :  { %984 = vsyncpa [#allocation6], 1 }
 0x1b7   :  { %985 = vsyncpa [#allocation10], 1 }
 0x1b8   :  { %986 = vsyncpa [#allocation13], 1 }
 0x1b9   :  { %987 = vsyncpa [#allocation7], 1 }

</bundles_post_ra>
